<compile_context>
chip_gen: v5e
topology: v5e:2x2
jax: 0.10.0
libtpu: 0.0.40
codegen_flags: <defaults>
</compile_context>

<pallas_src>
import functools

import jax
import jax.numpy as jnp
from jax.experimental import pallas as pl
from jax.experimental.pallas import tpu as pltpu


def _round_up(x, m):
    return ((x + m - 1) // m) * m


def _gru_rollout_kernel(x_ref, h0_ref, w_ref, b_ref, y_ref, h_ref,
                        *, d_in_pad, hidden_pad, p_pad):
    """One GRU step per grid iteration t; h carried in the resident h_ref block."""
    Hp = hidden_pad
    three_h = 3 * Hp

    @pl.when(pl.program_id(0) == 0)
    def _():
        h_ref[...] = h0_ref[...]

    x = x_ref[...]                       # (B, d_in_pad) f32
    h = h_ref[...]                       # (B, Hp)       f32
    wdt = w_ref.dtype                    # f32 or bf16 (weights only)

    # Static, tile-aligned views into the packed weight slab.
    wi = w_ref[0:d_in_pad, 0:three_h]                       # (d_in_pad, 3Hp)
    wh = w_ref[d_in_pad:d_in_pad + Hp, 0:three_h]           # (Hp, 3Hp)
    wl = w_ref[d_in_pad:d_in_pad + Hp, three_h:three_h + p_pad]  # (Hp, Pp)

    # Packed gate pre-activations (r | z | n), f32 accumulation on the MXU.
    gi = (jnp.dot(x.astype(wdt), wi, preferred_element_type=jnp.float32)
          + b_ref[0:1, 0:three_h])                          # + [bir+bhr|biz+bhz|bin]
    gh = (jnp.dot(h.astype(wdt), wh, preferred_element_type=jnp.float32)
          + b_ref[1:2, 0:three_h])                          # + [0|0|bhn]

    # Lane-tile-aligned gate slices (Hp is a multiple of 128).
    r = jax.nn.sigmoid(gi[:, 0:Hp] + gh[:, 0:Hp])
    z = jax.nn.sigmoid(gi[:, Hp:2 * Hp] + gh[:, Hp:2 * Hp])
    n = jnp.tanh(gi[:, 2 * Hp:] + r * gh[:, 2 * Hp:])
    h_new = (1.0 - z) * n + z * h                           # f32 elementwise

    # Linear head, lane-dense (Pp = multiple of 128) output.
    y = (jnp.dot(h_new.astype(wdt), wl, preferred_element_type=jnp.float32)
         + b_ref[0:1, three_h:three_h + p_pad])

    h_ref[...] = h_new
    y_ref[...] = y.astype(y_ref.dtype)


def _rollout_pallas(x_seq, h0, w_slab, b_slab, dims):
    T, B, Dp = x_seq.shape
    Hp, Pp = dims["H_pad"], dims["P_pad"]

    kernel = functools.partial(_gru_rollout_kernel,
                               d_in_pad=Dp, hidden_pad=Hp, p_pad=Pp)

    y_seq, h_final = pl.pallas_call(
        kernel,
        grid=(T,),
        in_specs=[
            pl.BlockSpec((None, B, Dp), lambda t: (t, 0, 0)),   # per-step input
            pl.BlockSpec((B, Hp), lambda t: (0, 0)),            # h0 (resident)
            pl.BlockSpec(w_slab.shape, lambda t: (0, 0)),       # weights (resident)
            pl.BlockSpec(b_slab.shape, lambda t: (0, 0)),       # biases (resident)
        ],
        out_specs=(
            pl.BlockSpec((None, B, Pp), lambda t: (t, 0, 0)),   # y_t streamed out
            pl.BlockSpec((B, Hp), lambda t: (0, 0)),            # h carried/resident
        ),
        out_shape=(jax.ShapeDtypeStruct((T, B, Pp), jnp.float32),
                   jax.ShapeDtypeStruct((B, Hp), jnp.float32)),
        compiler_params=pltpu.CompilerParams(
            dimension_semantics=("arbitrary",)),   # recurrent axis: sequential
    )(x_seq, h0, w_slab, b_slab)
    return y_seq, h_final


def nonlinear_controller_rollout(required_seq, plant_seq, hidden_state, packed):
    """Run T GRU steps + per-step linear head inside one pallas_call.

    required_seq: (T, B, required_dim), plant_seq: (T, B, plant_output_dim),
    hidden_state: (B, hidden_dim).  Returns (y_seq (T,B,P), h_final (B,H)).
    """
    dims = packed["dims"]
    d_in, Dp = dims["d_in"], dims["d_in_pad"]
    H, Hp, P = dims["H"], dims["H_pad"], dims["P"]

    # Layout plumbing only (one XLA op each for the whole sequence).
    x_seq = jnp.concatenate([required_seq, plant_seq], axis=-1).astype(jnp.float32)
    x_seq = jnp.pad(x_seq, ((0, 0), (0, 0), (0, Dp - d_in)))
    h0 = jnp.pad(hidden_state.astype(jnp.float32), ((0, 0), (0, Hp - H)))

    y_seq, h_final = _rollout_pallas(x_seq, h0, packed["w_slab"],
                                     packed["b_slab"], dims)
    return y_seq[:, :, :P], h_final[:, :H]


def nonlinear_controller_forward(required_state, plant_state, hidden_state, packed):
    """Single-step forward matching PyTorch NonLinearController.forward (T=1)."""
    y_seq, h_final = nonlinear_controller_rollout(
        required_state[None], plant_state[None], hidden_state, packed)
    return y_seq[0], h_final


def init_params(key, required_dim, plant_output_dim, plant_input_dim, hidden_dim):
    """Synthetic per-gate parameters with PyTorch GRU semantics (gate order r,z,n).

    Each gate weight is stored transposed: [in_features, out_features].
    """
    d_in = required_dim + plant_output_dim
    k = 1.0 / jnp.sqrt(hidden_dim)
    keys = jax.random.split(key, 16)
    u = lambda kk, shape: jax.random.uniform(kk, shape, jnp.float32, -k, k)
    return {
        "w_ir": u(keys[0], (d_in, hidden_dim)),
        "w_iz": u(keys[1], (d_in, hidden_dim)),
        "w_in": u(keys[2], (d_in, hidden_dim)),
        "w_hr": u(keys[3], (hidden_dim, hidden_dim)),
        "w_hz": u(keys[4], (hidden_dim, hidden_dim)),
        "w_hn": u(keys[5], (hidden_dim, hidden_dim)),
        "b_ir": u(keys[6], (1, hidden_dim)),
        "b_iz": u(keys[7], (1, hidden_dim)),
        "b_in": u(keys[8], (1, hidden_dim)),
        "b_hr": u(keys[9], (1, hidden_dim)),
        "b_hz": u(keys[10], (1, hidden_dim)),
        "b_hn": u(keys[11], (1, hidden_dim)),
        "w_lin": u(keys[12], (hidden_dim, plant_input_dim)),
        "b_lin": u(keys[13], (1, plant_input_dim)),
    }


def pack_params(p, required_dim, plant_output_dim, hidden_dim, plant_input_dim,
                weight_dtype=jnp.bfloat16):
    """One-time fold of per-gate params into two pre-padded VMEM slabs."""
    d_in = required_dim + plant_output_dim
    H, P = hidden_dim, plant_input_dim
    Hp = _round_up(H, 128)          # each gate gets its own 128-lane-aligned slot
    Pp = _round_up(P, 128)          # lane-dense head output
    Dp = _round_up(d_in, 16)        # sublane-aligned row split for f32 AND bf16
    three_h = 3 * Hp

    def pad_w(w, rows, cols):       # zero-pad (r0, c0) -> (rows, cols)
        return jnp.zeros((rows, cols), jnp.float32).at[:w.shape[0], :w.shape[1]].set(w)

    wi = jnp.concatenate([pad_w(p["w_ir"], Dp, Hp),
                          pad_w(p["w_iz"], Dp, Hp),
                          pad_w(p["w_in"], Dp, Hp)], axis=1)    # (Dp, 3Hp)
    wh = jnp.concatenate([pad_w(p["w_hr"], Hp, Hp),
                          pad_w(p["w_hz"], Hp, Hp),
                          pad_w(p["w_hn"], Hp, Hp)], axis=1)    # (Hp, 3Hp)
    wl = pad_w(p["w_lin"], Hp, Pp)                              # (Hp, Pp)

    w_slab = jnp.zeros((Dp + Hp, three_h + Pp), jnp.float32)
    w_slab = w_slab.at[:Dp, :three_h].set(wi)
    w_slab = w_slab.at[Dp:, :three_h].set(wh)
    w_slab = w_slab.at[Dp:, three_h:].set(wl)
    w_slab = w_slab.astype(weight_dtype)

    def pad_b(b, cols):
        return jnp.zeros((1, cols), jnp.float32).at[:, :b.shape[1]].set(b)

    b_gi = jnp.concatenate([pad_b(p["b_ir"] + p["b_hr"], Hp),
                            pad_b(p["b_iz"] + p["b_hz"], Hp),
                            pad_b(p["b_in"], Hp)], axis=1)      # (1, 3Hp)
    b_gh = jnp.concatenate([jnp.zeros((1, 2 * Hp), jnp.float32),
                            pad_b(p["b_hn"], Hp)], axis=1)      # (1, 3Hp) = [0|0|bhn]
    b_lin = pad_b(p["b_lin"], Pp)                               # (1, Pp)

    b_slab = jnp.zeros((8, three_h + Pp), jnp.float32)
    b_slab = b_slab.at[0:1, :three_h].set(b_gi)
    b_slab = b_slab.at[0:1, three_h:].set(b_lin)
    b_slab = b_slab.at[1:2, :three_h].set(b_gh)

    return {
        "w_slab": w_slab,
        "b_slab": b_slab,
        "dims": dict(d_in=d_in, d_in_pad=Dp, H=H, H_pad=Hp, P=P, P_pad=Pp),
    }


# ----------------------------- pure-JAX references -----------------------------

def _reference_step(required_state, plant_state, hidden_state, p):
    x = jnp.concatenate([required_state, plant_state], axis=1)
    h = hidden_state
    r = jax.nn.sigmoid(x @ p["w_ir"] + p["b_ir"] + h @ p["w_hr"] + p["b_hr"])
    z = jax.nn.sigmoid(x @ p["w_iz"] + p["b_iz"] + h @ p["w_hz"] + p["b_hz"])
    n = jnp.tanh(x @ p["w_in"] + p["b_in"] + r * (h @ p["w_hn"] + p["b_hn"]))
    h_new = (1.0 - z) * n + z * h
    y = h_new @ p["w_lin"] + p["b_lin"]
    return y, h_new


def _reference_rollout(required_seq, plant_seq, hidden_state, p):
    def step(h, xs):
        req, pla = xs
        y, h_new = _reference_step(req, pla, h, p)
        return h_new, y
    h_final, ys = jax.lax.scan(step, hidden_state, (required_seq, plant_seq))
    return ys, h_final


if __name__ == "__main__":
    B = 2
    required_dim = 4
    plant_output_dim = 4
    plant_input_dim = 3
    hidden_dim = 16
    T = 8

    key = jax.random.PRNGKey(0)
    (k_req, k_plant, k_hid, k_params,
     k_seq_req, k_seq_pla) = jax.random.split(key, 6)

    required_state = jax.random.normal(k_req, (B, required_dim), jnp.float32)
    plant_state = jax.random.normal(k_plant, (B, plant_output_dim), jnp.float32)
    hidden_state = jax.random.normal(k_hid, (B, hidden_dim), jnp.float32)

    params = init_params(k_params, required_dim, plant_output_dim,
                         plant_input_dim, hidden_dim)

    # --- single-step forward (f32 weights): exact check vs f32 reference ---
    packed_f32 = pack_params(params, required_dim, plant_output_dim,
                             hidden_dim, plant_input_dim,
                             weight_dtype=jnp.float32)
    y, h_new = nonlinear_controller_forward(required_state, plant_state,
                                            hidden_state, packed_f32)
    jax.block_until_ready((y, h_new))
    y_ref, h_ref = _reference_step(required_state, plant_state,
                                   hidden_state, params)
    assert y.shape == (B, plant_input_dim)
    assert h_new.shape == (B, hidden_dim)
    assert jnp.allclose(y, y_ref, atol=1e-5), "single-step y mismatch"
    assert jnp.allclose(h_new, h_ref, atol=1e-5), "single-step hidden mismatch"

    # --- T-step rollout (time loop inside ONE pallas_call): vs scan reference ---
    req_seq = jax.random.normal(k_seq_req, (T, B, required_dim), jnp.float32)
    pla_seq = jax.random.normal(k_seq_pla, (T, B, plant_output_dim), jnp.float32)
    y_seq, h_T = nonlinear_controller_rollout(req_seq, pla_seq,
                                              hidden_state, packed_f32)
    jax.block_until_ready((y_seq, h_T))
    y_seq_ref, h_T_ref = _reference_rollout(req_seq, pla_seq, hidden_state, params)
    assert y_seq.shape == (T, B, plant_input_dim)
    assert jnp.allclose(y_seq, y_seq_ref, atol=1e-4), "rollout y mismatch"
    assert jnp.allclose(h_T, h_T_ref, atol=1e-4), "rollout hidden mismatch"

    # --- bf16 weights (halved HBM weight traffic), loose check vs f32 reference ---
    packed_bf16 = pack_params(params, required_dim, plant_output_dim,
                              hidden_dim, plant_input_dim,
                              weight_dtype=jnp.bfloat16)
    y_b, h_b = nonlinear_controller_forward(required_state, plant_state,
                                            hidden_state, packed_bf16)
    jax.block_until_ready((y_b, h_b))
    assert jnp.allclose(y_b, y_ref, atol=5e-2), "bf16-weight y mismatch"
    assert jnp.allclose(h_b, h_ref, atol=5e-2), "bf16-weight hidden mismatch"

    print("KERNEL_OK")
</pallas_src>

<mosaic_0001>
module attributes {stable_mosaic.version = 11 : i64} {
  func.func @_gru_rollout_kernel(%arg0: i32, %arg1: memref<1x2x16xf32, #tpu.memory_space<vmem>>, %arg2: memref<2x128xf32, #tpu.memory_space<vmem>>, %arg3: memref<144x512xf32, #tpu.memory_space<vmem>>, %arg4: memref<8x512xf32, #tpu.memory_space<vmem>>, %arg5: memref<1x2x128xf32, #tpu.memory_space<vmem>>, %arg6: memref<2x128xf32, #tpu.memory_space<vmem>>) attributes {dimension_semantics = [#tpu.dimension_semantics<arbitrary>], iteration_bounds = array<i64: 1>, scalar_prefetch = 0 : i64, scratch_operands = 0 : i64, tpu.core_type = #tpu.core_type<tc>, window_params = [{transform_indices = @transform_0, window_bounds = array<i64: 1, 2, 16>}, {pipeline_mode = #tpu.pipeline_mode<synchronous>, transform_indices = @transform_1, window_bounds = array<i64: 2, 128>}, {pipeline_mode = #tpu.pipeline_mode<synchronous>, transform_indices = @transform_2, window_bounds = array<i64: 144, 512>}, {pipeline_mode = #tpu.pipeline_mode<synchronous>, transform_indices = @transform_3, window_bounds = array<i64: 8, 512>}, {transform_indices = @transform_4, window_bounds = array<i64: 1, 2, 128>}, {pipeline_mode = #tpu.pipeline_mode<synchronous>, transform_indices = @transform_5, window_bounds = array<i64: 2, 128>}]} {
    %c0_i32 = arith.constant 0 : i32
    %0 = arith.cmpi eq, %arg0, %c0_i32 : i32
    %1 = arith.extui %0 : i1 to i32
    %c0_i32_0 = arith.constant 0 : i32
    %2 = arith.cmpi ne, %1, %c0_i32_0 : i32
    scf.if %2 {
      %c0_24 = arith.constant 0 : index
      %c0_25 = arith.constant 0 : index
      %51 = vector.load %arg2[%c0_24, %c0_25] : memref<2x128xf32, #tpu.memory_space<vmem>>, vector<2x128xf32>
      %c0_26 = arith.constant 0 : index
      %c0_27 = arith.constant 0 : index
      %52 = vector.load %arg6[%c0_26, %c0_27] : memref<2x128xf32, #tpu.memory_space<vmem>>, vector<2x128xf32>
      tpu.vector_store %arg6[%c0_26, %c0_27], %51 {strides = array<i32>} : memref<2x128xf32, #tpu.memory_space<vmem>>, vector<2x128xf32>,
    } else {
    }
    %c0 = arith.constant 0 : index
    %c0_1 = arith.constant 0 : index
    %c0_2 = arith.constant 0 : index
    %3 = vector.load %arg1[%c0, %c0_1, %c0_2] : memref<1x2x16xf32, #tpu.memory_space<vmem>>, vector<1x2x16xf32>
    %4 = vector.shape_cast %3 : vector<1x2x16xf32> to vector<2x16xf32>
    %c0_3 = arith.constant 0 : index
    %c0_4 = arith.constant 0 : index
    %5 = vector.load %arg6[%c0_3, %c0_4] : memref<2x128xf32, #tpu.memory_space<vmem>>, vector<2x128xf32>
    %c0_5 = arith.constant 0 : index
    %c0_6 = arith.constant 0 : index
    %6 = vector.load %arg3[%c0_5, %c0_6] : memref<144x512xf32, #tpu.memory_space<vmem>>, vector<16x384xf32>
    %c16 = arith.constant 16 : index
    %c0_7 = arith.constant 0 : index
    %7 = vector.load %arg3[%c16, %c0_7] : memref<144x512xf32, #tpu.memory_space<vmem>>, vector<128x384xf32>
    %c16_8 = arith.constant 16 : index
    %c384 = arith.constant 384 : index
    %8 = vector.load %arg3[%c16_8, %c384] : memref<144x512xf32, #tpu.memory_space<vmem>>, vector<128x128xf32>
    %cst = arith.constant dense<0.000000e+00> : vector<2x384xf32>
    %9 = tpu.matmul %4, %6, %cst {dimension_numbers = #tpu.dot_dimension_numbers<[1], [0], [0], [1], [0, 0, 1, 1], [], []>} : vector<2x16xf32>, vector<16x384xf32>, vector<2x384xf32> -> vector<2x384xf32>
    %c0_9 = arith.constant 0 : index
    %c0_10 = arith.constant 0 : index
    %10 = vector.load %arg4[%c0_9, %c0_10] : memref<8x512xf32, #tpu.memory_space<vmem>>, vector<1x384xf32>
    %11 = vector.broadcast %10 : vector<1x384xf32> to vector<2x384xf32>
    %12 = arith.addf %9, %11 : vector<2x384xf32>
    %cst_11 = arith.constant dense<0.000000e+00> : vector<2x384xf32>
    %13 = tpu.matmul %5, %7, %cst_11 {dimension_numbers = #tpu.dot_dimension_numbers<[1], [0], [0], [1], [0, 0, 1, 1], [], []>} : vector<2x128xf32>, vector<128x384xf32>, vector<2x384xf32> -> vector<2x384xf32>
    %c1 = arith.constant 1 : index
    %c0_12 = arith.constant 0 : index
    %14 = vector.load %arg4[%c1, %c0_12] : memref<8x512xf32, #tpu.memory_space<vmem>>, vector<1x384xf32>
    %15 = vector.broadcast %14 : vector<1x384xf32> to vector<2x384xf32>
    %16 = arith.addf %13, %15 : vector<2x384xf32>
    %17 = vector.extract_strided_slice %12 {offsets = [0, 0], sizes = [2, 128], strides = [1, 1]} : vector<2x384xf32> to vector<2x128xf32>
    %18 = vector.extract_strided_slice %16 {offsets = [0, 0], sizes = [2, 128], strides = [1, 1]} : vector<2x384xf32> to vector<2x128xf32>
    %19 = arith.addf %17, %18 : vector<2x128xf32>
    %20 = arith.negf %19 : vector<2x128xf32>
    %21 = math.exp %20 : vector<2x128xf32>
    %cst_13 = arith.constant 1.000000e+00 : f32
    %22 = vector.broadcast %cst_13 : f32 to vector<2x128xf32>
    %23 = arith.addf %22, %21 : vector<2x128xf32>
    %24 = arith.divf %22, %23 : vector<2x128xf32>
    %25 = vector.extract_strided_slice %12 {offsets = [0, 128], sizes = [2, 128], strides = [1, 1]} : vector<2x384xf32> to vector<2x128xf32>
    %26 = vector.extract_strided_slice %16 {offsets = [0, 128], sizes = [2, 128], strides = [1, 1]} : vector<2x384xf32> to vector<2x128xf32>
    %27 = arith.addf %25, %26 : vector<2x128xf32>
    %28 = arith.negf %27 : vector<2x128xf32>
    %29 = math.exp %28 : vector<2x128xf32>
    %cst_14 = arith.constant 1.000000e+00 : f32
    %30 = vector.broadcast %cst_14 : f32 to vector<2x128xf32>
    %31 = arith.addf %30, %29 : vector<2x128xf32>
    %32 = arith.divf %30, %31 : vector<2x128xf32>
    %33 = vector.extract_strided_slice %12 {offsets = [0, 256], sizes = [2, 128], strides = [1, 1]} : vector<2x384xf32> to vector<2x128xf32>
    %34 = vector.extract_strided_slice %16 {offsets = [0, 256], sizes = [2, 128], strides = [1, 1]} : vector<2x384xf32> to vector<2x128xf32>
    %35 = arith.mulf %24, %34 : vector<2x128xf32>
    %36 = arith.addf %33, %35 : vector<2x128xf32>
    %37 = math.tanh %36 : vector<2x128xf32>
    %cst_15 = arith.constant 1.000000e+00 : f32
    %38 = vector.broadcast %cst_15 : f32 to vector<2x128xf32>
    %39 = arith.subf %38, %32 : vector<2x128xf32>
    %40 = arith.mulf %39, %37 : vector<2x128xf32>
    %41 = arith.mulf %32, %5 : vector<2x128xf32>
    %42 = arith.addf %40, %41 : vector<2x128xf32>
    %cst_16 = arith.constant dense<0.000000e+00> : vector<2x128xf32>
    %43 = tpu.matmul %42, %8, %cst_16 {dimension_numbers = #tpu.dot_dimension_numbers<[1], [0], [0], [1], [0, 0, 1, 1], [], []>} : vector<2x128xf32>, vector<128x128xf32>, vector<2x128xf32> -> vector<2x128xf32>
    %c0_17 = arith.constant 0 : index
    %c384_18 = arith.constant 384 : index
    %44 = vector.load %arg4[%c0_17, %c384_18] : memref<8x512xf32, #tpu.memory_space<vmem>>, vector<1x128xf32>
    %45 = vector.broadcast %44 : vector<1x128xf32> to vector<2x128xf32>
    %46 = arith.addf %43, %45 : vector<2x128xf32>
    %c0_19 = arith.constant 0 : index
    %c0_20 = arith.constant 0 : index
    %47 = vector.load %arg6[%c0_19, %c0_20] : memref<2x128xf32, #tpu.memory_space<vmem>>, vector<2x128xf32>
    tpu.vector_store %arg6[%c0_19, %c0_20], %42 {strides = array<i32>} : memref<2x128xf32, #tpu.memory_space<vmem>>, vector<2x128xf32>,
    %c0_21 = arith.constant 0 : index
    %c0_22 = arith.constant 0 : index
    %c0_23 = arith.constant 0 : index
    %48 = vector.load %arg5[%c0_21, %c0_22, %c0_23] : memref<1x2x128xf32, #tpu.memory_space<vmem>>, vector<1x2x128xf32>
    %49 = vector.shape_cast %48 : vector<1x2x128xf32> to vector<2x128xf32>
    %50 = vector.shape_cast %46 : vector<2x128xf32> to vector<1x2x128xf32>
    tpu.vector_store %arg5[%c0_21, %c0_22, %c0_23], %50 {strides = array<i32>} : memref<1x2x128xf32, #tpu.memory_space<vmem>>, vector<1x2x128xf32>,
    return
  }
  func.func @transform_0(%arg0: i32) -> (i32, i32, i32) {
    %c0_i32 = arith.constant 0 : i32
    %c0_i32_0 = arith.constant 0 : i32
    %c0_i32_1 = arith.constant 0 : i32
    return %arg0, %c0_i32, %c0_i32_0 : i32, i32, i32
  }
  func.func @transform_1(%arg0: i32) -> (i32, i32) {
    %c0_i32 = arith.constant 0 : i32
    %c0_i32_0 = arith.constant 0 : i32
    %c0_i32_1 = arith.constant 0 : i32
    return %c0_i32, %c0_i32_0 : i32, i32
  }
  func.func @transform_2(%arg0: i32) -> (i32, i32) {
    %c0_i32 = arith.constant 0 : i32
    %c0_i32_0 = arith.constant 0 : i32
    %c0_i32_1 = arith.constant 0 : i32
    return %c0_i32, %c0_i32_0 : i32, i32
  }
  func.func @transform_3(%arg0: i32) -> (i32, i32) {
    %c0_i32 = arith.constant 0 : i32
    %c0_i32_0 = arith.constant 0 : i32
    %c0_i32_1 = arith.constant 0 : i32
    return %c0_i32, %c0_i32_0 : i32, i32
  }
  func.func @transform_4(%arg0: i32) -> (i32, i32, i32) {
    %c0_i32 = arith.constant 0 : i32
    %c0_i32_0 = arith.constant 0 : i32
    %c0_i32_1 = arith.constant 0 : i32
    return %arg0, %c0_i32, %c0_i32_0 : i32, i32, i32
  }
  func.func @transform_5(%arg0: i32) -> (i32, i32) {
    %c0_i32 = arith.constant 0 : i32
    %c0_i32_0 = arith.constant 0 : i32
    %c0_i32_1 = arith.constant 0 : i32
    return %c0_i32, %c0_i32_0 : i32, i32
  }
}

</mosaic_0001>

<bundles_post_ra>
// kernel: tpu_custom_call.1
= control target key start
LH: loop header
LB: loop body
LE: loop exit
PB: predicated region body
PF: predicated region fallthrough
CT: control target
= control target key end

     0   :  { %11 = vsyncpa [#allocation3], 0  ;;  %s654_s0 = inlined_call_operand.hbm [shape: f32[1,2,16], index: 0, kind: input, shape index: {}]   ;;  %s655_s1 = inlined_call_operand.hbm [shape: f32[2,128], index: 1, kind: input, shape index: {}]   ;;  %s656_s2 = inlined_call_operand.hbm [shape: f32[144,512], index: 2, kind: input, shape index: {}]   ;;  %s657_s3 = inlined_call_operand.hbm [shape: f32[8,512], index: 3, kind: input, shape index: {}]   ;;  %s658_s4 = inlined_call_operand.hbm [shape: f32[1,2,128], index: 4, kind: output, shape index: {0}]   ;;  %s659_s5 = inlined_call_operand.hbm [shape: f32[2,128], index: 5, kind: output, shape index: {1}]  }
   0x1   :  { %12 = vsyncpa [#allocation6], 0 }
   0x2   :  { %13 = vsyncpa [#allocation9], 0 }
   0x3   :  { %14 = vsyncpa [#allocation4], 0  ;;  %s32_s20 = sshll.u32 %s655_s1, 4  ;;  %s33_s20 = int_to_ptr.hbm [resolvable:$true] %s32_s20 }
   0x4   :  { %15 = vsyncpa [#allocation12], 0  ;;  %s579_s21 = smov [#allocation5]   ;;  %s21_s25 = sshll.u32 %s654_s0, 4  ;;  %s22_s25 = int_to_ptr.hbm [resolvable:$true] %s21_s25 }
   0x5   :  { %s34_s22 = sshll.u32 %s579_s21, 4  ;;  %s580_s26 = smov [#allocation2]   ;;  %s35_s22 = int_to_ptr.vmem [resolvable:$true] %s34_s22 }
   0x6   :  { %37 = dma.hbm_to_vmem [thread:$0]  %s33_s20, 32, %s35_s22, [#allocation6]  }
   0x7   :  { %s23_s27 = sshll.u32 %s580_s26, 4  ;;  %s42_s30 = sshll.u32 %s656_s2, 4  ;;  %s24_s27 = int_to_ptr.vmem [resolvable:$true] %s23_s27  ;;  %s43_s30 = int_to_ptr.hbm [resolvable:$true] %s42_s30 }
   0x8   :  { %26 = dma.hbm_to_vmem [thread:$0]  %s22_s25, 32, %s24_s27, [#allocation3]  }
   0x9   :  { %s581_s1 = smov [#allocation7]   ;;  %s56_s9 = sshll.u32 %s657_s3, 4  ;;  %s57_s9 = int_to_ptr.hbm [resolvable:$true] %s56_s9 }
   0xa   :  { %s44_s6 = sshll.u32 %s581_s1, 4  ;;  %s582_s10 = smov 512   ;;  %s45_s6 = int_to_ptr.vmem [resolvable:$true] %s44_s6 }
   0xb   :  { %s583_s0 = smov 32   ;;  %s584_s11 = smov [#allocation8]  }
   0xc   :  { %50 = dma.hbm_to_vmem [thread:$0]  %s43_s30, 9216, %s45_s6, [#allocation6], %s582_s10, %s582_s10, %s583_s0  }
   0xd   :  { %s58_s12 = sshll.u32 %s584_s11, 4  ;;  %s59_s12 = int_to_ptr.vmem [resolvable:$true] %s58_s12 }
   0xe   :  { %61 = dma.hbm_to_vmem [thread:$0]  %s57_s9, 512, %s59_s12, [#allocation9]  }
   0xf   :  { %569 = dma.done.wait [#allocation3], 32  }
  0x10   :  { %570 = vsyncadd [#allocation3], 4294967264 }
  0x11   :  { %571 = dma.done.wait [#allocation6], 9248  }
  0x12   :  { %572 = vsyncadd [#allocation6], 4294958048 }
  0x13   :  { %573 = dma.done.wait [#allocation9], 512  }
  0x14   :  { %574 = vsyncadd [#allocation9], 4294966784  ;;  %v89_v0 = vld [vmem:[#allocation7 + $0x20] sm:$0xff]  ;;  %v138_v4 = vld [vmem:[#allocation7 + $0x228] sm:$0xff]  ;;  %vm164_vm0 = vcmask 130048   ;;  %s585_s2 = smov [#allocation11]  }
  0x15   :  { %v137_v1 = vld [vmem:[#allocation7 + $0x220] sm:$0xff]  ;;  %182 = vmatpush.msra.mxu0 %v89_v0  ;;  %v135_v6 = vld [vmem:[#allocation7 + $0x208] sm:$0xff]  ;;  %v84_v13 = vld [vmem:[#allocation2] sm:$0x3]  ;;  %s383_s3 = sshll.u32 %s585_s2, 4  ;;  %s385_s15 = sshll.u32 %s659_s5, 4  ;;  %s384_s3 = int_to_ptr.vmem [resolvable:$true] %s383_s3  ;;  %s386_s15 = int_to_ptr.hbm [resolvable:$true] %s385_s15 }
  0x16   :  { %v86_v2 = vld [vmem:[#allocation7] sm:$0xff]  ;;  %237 = vmatpush.msra.mxu3 %v137_v1  ;;  %v132_v8 = vld [vmem:[#allocation7 + $0x1e8] sm:$0xff]  ;;  %v82_v17 = vld [vmem:[#allocation5] sm:$0x3]  ;;  %s586_s16 = smov [#allocation10]   ;;  %s374_s20 = sshll.u32 %s658_s4, 4  ;;  %s375_s20 = int_to_ptr.hbm [resolvable:$true] %s374_s20 }
  0x17   :  { %v134_v3 = vld [vmem:[#allocation7 + $0x200] sm:$0xff]  ;;  %183 = vmatpush.msra.mxu0 %v86_v2  ;;  %v129_v10 = vld [vmem:[#allocation7 + $0x1c8] sm:$0xff]  ;;  %83 = vst [vmem:[#allocation11] sm:$0x3] %v82_v17  ;;  %v139_v21 = vld [vmem:[#allocation7 + $0x230] sm:$0xff]  ;;  %s372_s17 = sshll.u32 %s586_s16, 4  ;;  %s373_s17 = int_to_ptr.vmem [resolvable:$true] %s372_s17 }
  0x18   :  { %v131_v5 = vld [vmem:[#allocation7 + $0x1e0] sm:$0xff]  ;;  %238 = vmatpush.msra.mxu3 %v134_v3  ;;  %v126_v12 = vld [vmem:[#allocation7 + $0x1a8] sm:$0xff]  ;;  %402 = vmatmul.msk.f32.vlgmr.msra.gmra.mxu0 %vm164_vm0, %v84_v13  ;;  %v136_v24 = vld [vmem:[#allocation7 + $0x210] sm:$0xff] }
  0x19   :  { %257 = vmatpush.msrb.mxu0 %v138_v4  ;;  %v128_v7 = vld [vmem:[#allocation7 + $0x1c0] sm:$0xff]  ;;  %v123_v15 = vld [vmem:[#allocation7 + $0x188] sm:$0xff]  ;;  %v91_v26 = vld [vmem:[#allocation7 + $0x30] sm:$0xff] }
  0x1a   :  { %239 = vmatpush.msra.mxu3 %v131_v5  ;;  %v125_v9 = vld [vmem:[#allocation7 + $0x1a0] sm:$0xff]  ;;  %v90_v16 = vld [vmem:[#allocation7 + $0x28] sm:$0xff]  ;;  %v133_v28 = vld [vmem:[#allocation7 + $0x1f0] sm:$0xff]  ;;  %222 = vmatpush.msra.mxu2 %v91_v26 }
  0x1b   :  { %258 = vmatpush.msrb.mxu0 %v135_v6  ;;  %v122_v11 = vld [vmem:[#allocation7 + $0x180] sm:$0xff]  ;;  %202 = vmatpush.msra.mxu1 %v90_v16  ;;  %v87_v19 = vld [vmem:[#allocation7 + $0x8] sm:$0xff]  ;;  %v88_v29 = vld [vmem:[#allocation7 + $0x10] sm:$0xff] }
  0x1c   :  { %240 = vmatpush.msra.mxu3 %v128_v7  ;;  %v119_v14 = vld [vmem:[#allocation7 + $0x160] sm:$0xff]  ;;  %v120_v20 = vld [vmem:[#allocation7 + $0x168] sm:$0xff]  ;;  %v130_v32 = vld [vmem:[#allocation7 + $0x1d0] sm:$0xff]  ;;  %223 = vmatpush.msra.mxu2 %v88_v29 }
  0x1d   :  { %259 = vmatpush.msrb.mxu0 %v132_v8  ;;  %v116_v18 = vld [vmem:[#allocation7 + $0x140] sm:$0xff]  ;;  %203 = vmatpush.msra.mxu1 %v87_v19  ;;  %v117_v23 = vld [vmem:[#allocation7 + $0x148] sm:$0xff]  ;;  %v127_v35 = vld [vmem:[#allocation7 + $0x1b0] sm:$0xff] }
  0x1e   :  { %241 = vmatpush.msra.mxu3 %v125_v9  ;;  %v113_v22 = vld [vmem:[#allocation7 + $0x120] sm:$0xff]  ;;  %403 = vmatmul.msk.f32.vlgmr.msra.gmra.mxu1 %vm164_vm0, %v84_v13  ;;  %v114_v27 = vld [vmem:[#allocation7 + $0x128] sm:$0xff]  ;;  %v124_v38 = vld [vmem:[#allocation7 + $0x190] sm:$0xff] }
  0x1f   :  { %260 = vmatpush.msrb.mxu0 %v129_v10  ;;  %v110_v25 = vld [vmem:[#allocation7 + $0x100] sm:$0xff]  ;;  %277 = vmatpush.msrb.mxu1 %v139_v21  ;;  %v111_v31 = vld [vmem:[#allocation7 + $0x108] sm:$0xff]  ;;  %v121_v41 = vld [vmem:[#allocation7 + $0x170] sm:$0xff] }
  0x20   :  { %242 = vmatpush.msra.mxu3 %v122_v11  ;;  %v107_v30 = vld [vmem:[#allocation7 + $0xe0] sm:$0xff]  ;;  %v108_v34 = vld [vmem:[#allocation7 + $0xe8] sm:$0xff]  ;;  %404 = vmatmul.msk.f32.vlgmr.msra.gmra.mxu2 %vm164_vm0, %v84_v13  ;;  %v118_v44 = vld [vmem:[#allocation7 + $0x150] sm:$0xff] }
  0x21   :  { %261 = vmatpush.msrb.mxu0 %v126_v12  ;;  %278 = vmatpush.msrb.mxu1 %v136_v24  ;;  %v104_v33 = vld [vmem:[#allocation7 + $0xc0] sm:$0xff]  ;;  %v105_v37 = vld [vmem:[#allocation7 + $0xc8] sm:$0xff]  ;;  %v115_v48 = vld [vmem:[#allocation7 + $0x130] sm:$0xff] }
  0x22   :  { %243 = vmatpush.msra.mxu3 %v119_v14  ;;  %v101_v36 = vld [vmem:[#allocation7 + $0xa0] sm:$0xff]  ;;  %v102_v40 = vld [vmem:[#allocation7 + $0xa8] sm:$0xff]  ;;  %v112_v50 = vld [vmem:[#allocation7 + $0x110] sm:$0xff] }
  0x23   :  { %262 = vmatpush.msrb.mxu0 %v123_v15  ;;  %279 = vmatpush.msrb.mxu1 %v133_v28  ;;  %v98_v39 = vld [vmem:[#allocation7 + $0x80] sm:$0xff]  ;;  %v99_v43 = vld [vmem:[#allocation7 + $0x88] sm:$0xff]  ;;  %v109_v51 = vld [vmem:[#allocation7 + $0xf0] sm:$0xff] }
  0x24   :  { %244 = vmatpush.msra.mxu3 %v116_v18  ;;  %v95_v42 = vld [vmem:[#allocation7 + $0x60] sm:$0xff]  ;;  %v96_v47 = vld [vmem:[#allocation7 + $0x68] sm:$0xff]  ;;  %v106_v52 = vld [vmem:[#allocation7 + $0xd0] sm:$0xff] }
  0x25   :  { %263 = vmatpush.msrb.mxu0 %v120_v20  ;;  %280 = vmatpush.msrb.mxu1 %v130_v32  ;;  %v92_v45 = vld [vmem:[#allocation7 + $0x40] sm:$0xff]  ;;  %v93_v49 = vld [vmem:[#allocation7 + $0x48] sm:$0xff]  ;;  %v103_v53 = vld [vmem:[#allocation7 + $0xb0] sm:$0xff] }
  0x26   :  { %245 = vmatpush.msra.mxu3 %v113_v22  ;;  %v632_v46 = vld [vmem:[#allocation11] sm:$0x3]  ;;  %v100_v54 = vld [vmem:[#allocation7 + $0x90] sm:$0xff]  ;;  %v155_v57 = vld [vmem:[#allocation7 + $0x238] sm:$0xff] }
  0x27   :  { %264 = vmatpush.msrb.mxu0 %v117_v23  ;;  %281 = vmatpush.msrb.mxu1 %v127_v35  ;;  %v97_v55 = vld [vmem:[#allocation7 + $0x70] sm:$0xff]  ;;  %v154_v58 = vld [vmem:[#allocation7 + $0x218] sm:$0xff] }
  0x28   :  { %246 = vmatpush.msra.mxu3 %v110_v25  ;;  %v94_v56 = vld [vmem:[#allocation7 + $0x50] sm:$0xff]  ;;  %345 = vmatpush.msrb.mxu2 %v155_v57  ;;  %v153_v60 = vld [vmem:[#allocation7 + $0x1f8] sm:$0xff] }
  0x29   :  { %265 = vmatpush.msrb.mxu0 %v114_v27  ;;  %282 = vmatpush.msrb.mxu1 %v124_v38  ;;  %v152_v61 = vld [vmem:[#allocation7 + $0x1d8] sm:$0xff]  ;;  %v637_v62 = vld [vmem:[#allocation8] ss:$8 sm:$0x7] }
  0x2a   :  { %247 = vmatpush.msra.mxu3 %v107_v30  ;;  %346 = vmatpush.msrb.mxu2 %v154_v58  ;;  %v151_v63 = vld [vmem:[#allocation7 + $0x1b8] sm:$0xff]  ;;  %v639_v0 = vld [vmem:[#allocation8 + $0x1] ss:$8 sm:$0x7]  ;;  %v159_v1 = vperm.slane %v637_v62, 1  ;;  %v158_v6 = vperm.slane %v637_v62, 0 }
  0x2b   :  { %266 = vmatpush.msrb.mxu0 %v111_v31  ;;  %283 = vmatpush.msrb.mxu1 %v121_v41  ;;  %v150_v2 = vld [vmem:[#allocation7 + $0x198] sm:$0xff]  ;;  %v232_v4 = vperm.slane %v639_v0, 1  ;;  %v231_v9 = vperm.slane %v639_v0, 0 }
  0x2c   :  { %248 = vmatpush.msra.mxu3 %v104_v33  ;;  %347 = vmatpush.msrb.mxu2 %v153_v60  ;;  %v149_v5 = vld [vmem:[#allocation7 + $0x178] sm:$0xff] }
  0x2d   :  { %267 = vmatpush.msrb.mxu0 %v108_v34  ;;  %284 = vmatpush.msrb.mxu1 %v118_v44  ;;  %v148_v11 = vld [vmem:[#allocation7 + $0x158] sm:$0xff] }
  0x2e   :  { %249 = vmatpush.msra.mxu3 %v101_v36  ;;  %348 = vmatpush.msrb.mxu2 %v152_v61  ;;  %v147_v15 = vld [vmem:[#allocation7 + $0x138] sm:$0xff]  ;;  %v233_v36 = vperm.slane %v639_v0, 2 }
  0x2f   :  { %268 = vmatpush.msrb.mxu0 %v105_v37  ;;  %285 = vmatpush.msrb.mxu1 %v115_v48  ;;  %v146_v18 = vld [vmem:[#allocation7 + $0x118] sm:$0xff] }
  0x30   :  { %250 = vmatpush.msra.mxu3 %v98_v39  ;;  %349 = vmatpush.msrb.mxu2 %v151_v63  ;;  %v145_v20 = vld [vmem:[#allocation7 + $0xf8] sm:$0xff] }
  0x31   :  { %269 = vmatpush.msrb.mxu0 %v102_v40  ;;  %286 = vmatpush.msrb.mxu1 %v112_v50  ;;  %v144_v22 = vld [vmem:[#allocation7 + $0xd8] sm:$0xff] }
  0x32   :  { %251 = vmatpush.msra.mxu3 %v95_v42  ;;  %350 = vmatpush.msrb.mxu2 %v150_v2  ;;  %v143_v23 = vld [vmem:[#allocation7 + $0xb8] sm:$0xff]  ;;  %v160_v42 = vperm.slane %v637_v62, 2 }
  0x33   :  { %270 = vmatpush.msrb.mxu0 %v99_v43  ;;  %287 = vmatpush.msrb.mxu1 %v109_v51  ;;  %v142_v24 = vld [vmem:[#allocation7 + $0x98] sm:$0xff] }
  0x34   :  { %252 = vmatpush.msra.mxu3 %v92_v45  ;;  %351 = vmatpush.msrb.mxu2 %v149_v5  ;;  %v141_v26 = vld [vmem:[#allocation7 + $0x78] sm:$0xff] }
  0x35   :  { %253 = vmatmul.f32.vlgmr.msra.gmra.mxu3 %v632_v46  ;;  %271 = vmatpush.msrb.mxu0 %v96_v47  ;;  %v140_v28 = vld [vmem:[#allocation7 + $0x58] sm:$0xff] }
  0x36   :  { %288 = vmatpush.msrb.mxu1 %v106_v52  ;;  %352 = vmatpush.msrb.mxu2 %v148_v11 }
  0x37   :  { %272 = vmatpush.msrb.mxu0 %v93_v49 }
  0x38   :  { %273 = vmatmul.f32.vlgmr.msrb.gmra.mxu0 %v632_v46  ;;  %289 = vmatpush.msrb.mxu1 %v103_v53 }
  0x39   :  { %353 = vmatpush.msrb.mxu2 %v147_v15 }
  0x3a   :  { %290 = vmatpush.msrb.mxu1 %v100_v54 }
  0x3b   :  { %354 = vmatpush.msrb.mxu2 %v146_v18 }
  0x3c   :  { %291 = vmatpush.msrb.mxu1 %v97_v55 }
  0x3d   :  { %355 = vmatpush.msrb.mxu2 %v145_v20 }
  0x3e   :  { %292 = vmatpush.msrb.mxu1 %v94_v56 }
  0x3f   :  { %293 = vmatmul.f32.vlgmr.msrb.gmra.mxu1 %v632_v46  ;;  %356 = vmatpush.msrb.mxu2 %v144_v22 }
  0x41   :  { %357 = vmatpush.msrb.mxu2 %v143_v23 }
  0x43   :  { %358 = vmatpush.msrb.mxu2 %v142_v24 }
  0x45   :  { %359 = vmatpush.msrb.mxu2 %v141_v26 }
  0x47   :  { %360 = vmatpush.msrb.mxu2 %v140_v28 }
  0x95   :  { %v185_v59 = vpop.f32.mrf.mxu0 }
  0x96   :  { %v186_v12 = vadd.f32 %v185_v59, %v158_v6 }
  0x9b   :  { %v205_v3 = vpop.f32.mrf.mxu1 }
  0x9c   :  { %v206_v7 = vadd.f32 %v205_v3, %v159_v1  ;;  %v344_v1 = vld [vmem:[#allocation8 + $0x18] ss:$0 sm:$0xff] }
  0xa3   :  { %v225_v43 = vpop.f32.mrf.mxu2 }
  0xa4   :  { %v226_v50 = vadd.f32 %v225_v43, %v160_v42 }
  0xb5   :  { %v274_v8 = vpop.f32.mrf.mxu0 }
  0xb6   :  { %v275_v10 = vadd.f32 %v274_v8, %v232_v4 }
  0xb8   :  { %v317_v13 = vadd.f32 %v275_v10, %v206_v7  ;;  %v254_v14 = vpop.f32.mrf.mxu3 }
  0xb9   :  { %v255_v16 = vadd.f32 %v254_v14, %v231_v9 }
  0xba   :  { %v406_v17 = vmul.f32 -1.442695, %v317_v13 }
  0xbb   :  { %v297_v19 = vadd.f32 %v255_v16, %v186_v12 }
  0xbc   :  { %415 = vpow2.f32 %v406_v17  ;;  %v294_v38 = vpop.f32.mrf.mxu1 }
  0xbd   :  { %v405_v21 = vmul.f32 -1.442695, %v297_v19  ;;  %v295_v45 = vadd.f32 %v294_v38, %v233_v36 }
  0xbf   :  { %417 = vpow2.f32 %v405_v21 }
  0xc2   :  { %v416_v25 = vpop.eup %415 }
  0xc3   :  { %v321_v27 = vadd.f32 1.0, %v416_v25 }
  0xc5   :  { %v418_v29 = vpop.eup %417  ;;  %419 = vrcp.f32 %v321_v27  ;;  %vm327_vm4 = vweird.f32 %v321_v27  ;;  %v333_v51 = vand.u32 2147483648, %v321_v27  ;;  %v331_v54 = vand.u32 2147483647, %v321_v27 }
  0xc6   :  { %v301_v30 = vadd.f32 1.0, %v418_v29 }
  0xc7   :  { %v334_v57 = vor.u32 1.1754944e-38, %v333_v51  ;;  %vm332_vm8 = vcmp.eq.f32.partialorder %v331_v54, 8.507059e+37 }
  0xc8   :  { %421 = vrcp.f32 %v301_v30  ;;  %v313_v39 = vand.u32 2147483648, %v301_v30  ;;  %v311_v41 = vand.u32 2147483647, %v301_v30  ;;  %vm307_vm2 = vweird.f32 %v301_v30 }
  0xca   :  { %v314_v48 = vor.u32 1.1754944e-38, %v313_v39  ;;  %vm312_vm6 = vcmp.eq.f32.partialorder %v311_v41, 8.507059e+37 }
  0xcb   :  { %v420_v31 = vpop.eup %419 }
  0xcc   :  { %v323_v32 = vmul.f32 %v420_v31, %v321_v27  ;;  %vm328_vm5 = vweird.f32 %v420_v31 }
  0xcd   :  { %vm329_vm7 = vmor %vm327_vm4, %vm328_vm5 }
  0xce   :  { %v422_v33 = vpop.eup %421  ;;  %v324_v35 = vsub.f32 1.0, %v323_v32 }
  0xcf   :  { %v303_v34 = vmul.f32 %v422_v33, %v301_v30  ;;  %vm308_vm1 = vweird.f32 %v422_v33 }
  0xd0   :  { %v325_v44 = vmul.f32 %v420_v31, %v324_v35  ;;  %vm309_vm3 = vmor %vm307_vm2, %vm308_vm1 }
  0xd1   :  { %v304_v37 = vsub.f32 1.0, %v303_v34 }
  0xd2   :  { %v326_v53 = vadd.f32 %v420_v31, %v325_v44 }
  0xd3   :  { %v305_v40 = vmul.f32 %v422_v33, %v304_v37 }
  0xd4   :  { %v330_v58 = vsel %vm329_vm7, %v420_v31, %v326_v53 }
  0xd5   :  { %v306_v47 = vadd.f32 %v422_v33, %v305_v40  ;;  %v335_v59 = vsel %vm332_vm8, %v334_v57, %v330_v58 }
  0xd6   :  { %v340_v60 = vsub.f32 1.0, %v335_v59  ;;  %v342_v63 = vmul.f32 %v335_v59, %v632_v46 }
  0xd7   :  { %v310_v49 = vsel %vm309_vm3, %v422_v33, %v306_v47 }
  0xd8   :  { %v315_v52 = vsel %vm312_vm6, %v314_v48, %v310_v49 }
  0xd9   :  { %v337_v55 = vmul.f32 %v315_v52, %v295_v45 }
  0xdb   :  { %v338_v56 = vadd.f32 %v337_v55, %v226_v50 }
  0xdd   :  { %423 = vtanh.f32 %v338_v56 }
  0xe3   :  { %v424_v61 = vpop.eup %423 }
  0xe4   :  { %v341_v62 = vmul.f32 %v424_v61, %v340_v60 }
  0xe6   :  { %v343_v0 = vadd.f32 %v342_v63, %v341_v62 }
  0xe8   :  { %361 = vmatmul.f32.vlgmr.msrb.gmra.mxu2 %v343_v0  ;;  %365 = vst [vmem:[#allocation11] sm:$0x3] %v343_v0 }
  0xe9   :  { %388 = dma.vmem_to_hbm [thread:$0]  %s384_s3, 32, %s386_s15, [#allocation12]  }
 0x16b   :  { %v362_v46 = vpop.f32.mrf.mxu2 }
 0x16c   :  { %v363_v2 = vadd.f32 %v362_v46, %v344_v1 }
 0x16e   :  { %366 = vst [vmem:[#allocation10] sm:$0x3] %v363_v2 }
 0x16f   :  { %377 = dma.vmem_to_hbm [thread:$0]  %s373_s17, 32, %s375_s20, [#allocation4]  }
 0x170   :  { %575 = dma.done.wait [#allocation4], 32  }
 0x171   :  { %576 = vsyncadd [#allocation4], 4294967264 }
 0x172   :  { %577 = dma.done.wait [#allocation12], 32  }
 0x173   :  { %578 = vsyncadd [#allocation12], 4294967264 }
 0x174   :  { %397 = vsyncpa [#allocation3], 1 }
 0x175   :  { %398 = vsyncpa [#allocation6], 1 }
 0x176   :  { %399 = vsyncpa [#allocation9], 1 }
 0x177   :  { %400 = vsyncpa [#allocation4], 1 }
 0x178   :  { %401 = vsyncpa [#allocation12], 1 }

</bundles_post_ra>
